<compile_context>
chip_gen: v5e
topology: v5e:2x2
jax: 0.10.0
libtpu: 0.0.40
codegen_flags: <defaults>
</compile_context>

<pallas_src>
import jax
import jax.numpy as jnp
from jax.experimental import pallas as pl
from jax.experimental.pallas import tpu as pltpu

LANE = 128
MAX_TILE = 65536  # lanes per grid step.  Double-buffered footprint at 64K lanes
                  # is ~8.5 MiB (3 inputs x (3,64K) + (8,64K) out, f32, x2 bufs):
                  # safe even on v5e's default scoped VMEM, and big enough to
                  # amortize the ~0.35us per-step overhead on v6e/v7x HBM.


# ----------------------------- Pallas kernel ------------------------------- #

def _fused_v7_kernel(x1_ref, x2_ref, x4_ref, w1_ref, w2_ref, w4_ref, o_ref):
    # x*: (3, T), w*: (8, 3) -> o: (8, T).  Bias is NOT added here: the
    # epilogue pad+bias pass has to touch the whole padded output anyway.
    acc = jnp.dot(w1_ref[...], x1_ref[...], preferred_element_type=jnp.float32)
    acc = acc + jnp.dot(w2_ref[...], x2_ref[...],
                        preferred_element_type=jnp.float32)
    acc = acc + jnp.dot(w4_ref[...], x4_ref[...],
                        preferred_element_type=jnp.float32)
    o_ref[...] = acc


def fused_conv1x1_pallas(x1, x2, x4, w1, w2, w4, tile):
    # x*: (N, 3, HW)  channels on sublanes / pixels lane-dense.  w*: (8, 3).
    n, cin, hw = x1.shape
    cout = w1.shape[0]
    hw_steps = -(-hw // tile)

    cost = pl.CostEstimate(
        flops=2 * cout * cin * hw * n * 3,          # three (8,3)@(3,HW) dots
        transcendentals=0,
        bytes_accessed=4 * n * hw * (3 * cin + cout),
    )

    x_spec = pl.BlockSpec((pl.Squeezed(), cin, tile), lambda b, t: (b, 0, t))
    w_spec = pl.BlockSpec((cout, cin), lambda b, t: (0, 0))

    return pl.pallas_call(
        _fused_v7_kernel,
        out_shape=jax.ShapeDtypeStruct((n, cout, hw), jnp.float32),
        grid=(n, hw_steps),
        in_specs=[x_spec, x_spec, x_spec, w_spec, w_spec, w_spec],
        out_specs=pl.BlockSpec((pl.Squeezed(), cout, tile),
                               lambda b, t: (b, 0, t)),
        compiler_params=pltpu.CompilerParams(
            dimension_semantics=("parallel", "parallel"),
            vmem_limit_bytes=32 * 1024 * 1024,
        ),
        cost_estimate=cost,
    )(x1, x2, x4, w1, w2, w4)


# ------------------------------- glue / host -------------------------------- #

def _round_up(x, m):
    return ((x + m - 1) // m) * m


def init_params(key):
    """Deterministic init matching the shapes declared in Model.__init__."""
    def conv_init(k, cout, cin):
        kw, kb = jax.random.split(k)
        scale = 1.0 / jnp.sqrt(cin)
        w = jax.random.uniform(kw, (cout, cin, 1, 1), jnp.float32, -scale, scale)
        b = jax.random.uniform(kb, (cout,), jnp.float32, -scale, scale)
        return w, b

    keys = jax.random.split(key, 7)
    p = {}
    p["w1"], p["b1"] = conv_init(keys[0], 8, 3)         # conv1
    p["w2"], p["b2"] = conv_init(keys[1], 8, 3)         # conv2
    p["w3"], p["b3"] = conv_init(keys[2], 8, 3)         # conv3 (dead in ref)
    p["w4"], p["b4"] = conv_init(keys[3], 8, 3)         # conv4
    # conv5: ConvTranspose2d(3, 8, 1) -> weight shape (in=3, out=8, 1, 1)
    kw5, kb5 = jax.random.split(keys[4])
    s5 = 1.0 / jnp.sqrt(3.0)
    p["w5"] = jax.random.uniform(kw5, (3, 8, 1, 1), jnp.float32, -s5, s5)
    p["b5"] = jax.random.uniform(kb5, (8,), jnp.float32, -s5, s5)
    p["w6"], p["b6"] = conv_init(keys[5], 8, 3)         # conv6 (ill-typed in ref)
    p["w7"], p["b7"] = conv_init(keys[6], 3, 3)         # conv7 (ill-typed in ref)
    return p


@jax.jit
def model_forward(params, x1, x2, x3, x4, x5):
    del x3  # TODO(synk): v4 = conv3(x3) is dead code in the reference; skipped.

    n, _, h, w = x1.shape
    assert x2.shape == x1.shape and x4.shape == x1.shape, (
        "x1/x2/x4 must match spatially for the adds in the reference forward")
    hw = h * w

    # Tile selection: full-extent HW block when it fits (no padding, no ragged
    # blocks); otherwise large lane-multiple tiles with a best-effort even
    # step count so v7x's two TensorCores stay balanced.  Partial trailing
    # blocks (hw not a multiple of tile) are handled by Pallas (OOB lanes are
    # dropped on store).
    if hw <= MAX_TILE:
        tile = hw
    else:
        steps = -(-hw // MAX_TILE)
        steps += steps % 2
        tile = _round_up(-(-hw // steps), LANE)

    # Free reshapes of contiguous NCHW: no host transpose / concat / pad pass.
    x1f = x1.reshape(n, 3, hw)
    x2f = x2.reshape(n, 3, hw)
    x4f = x4.reshape(n, 3, hw)
    w1 = params["w1"].reshape(8, 3)
    w2 = params["w2"].reshape(8, 3)
    w4 = params["w4"].reshape(8, 3)

    # --- single fused Pallas launch over the interior pixels (bias-free) ---
    out_flat = fused_conv1x1_pallas(x1f, x2f, x4f, w1, w2, w4, tile)
    interior = out_flat.reshape(n, 8, h, w)          # free reshape back to NCHW

    # conv5 on the (1,3,1,1) input is a per-channel constant; fold it together
    # with all conv biases.  For a 1x1 conv with padding=1 the 1-pixel output
    # border equals the bias, so zero-pad the interior and add the summed bias
    # in one fused pad+broadcast+add pass.
    x5v = x5.reshape(3)
    c5 = jnp.einsum("i,io->o", x5v, params["w5"].reshape(3, 8)) + params["b5"]
    b_tot = params["b1"] + params["b2"] + params["b4"] + c5              # (8,)
    v7 = (jnp.pad(interior, ((0, 0), (0, 0), (1, 1), (1, 1)))
          + b_tot[None, :, None, None])
    return v7


# ------------------------------- reference ---------------------------------- #

def _ref_conv1x1_pad1(x, w, b):
    y = jax.lax.conv_general_dilated(
        x, w, window_strides=(1, 1), padding=((1, 1), (1, 1)),
        dimension_numbers=("NCHW", "OIHW", "NCHW"))
    return y + b[None, :, None, None]


def _ref_v7(params, x1, x2, x4, x5):
    r1 = _ref_conv1x1_pad1(x1, params["w1"], params["b1"])
    r2 = _ref_conv1x1_pad1(x2, params["w2"], params["b2"])
    r4 = _ref_conv1x1_pad1(x4, params["w4"], params["b4"])
    c5 = (jnp.einsum("i,io->o", x5.reshape(3), params["w5"].reshape(3, 8))
          + params["b5"]).reshape(1, 8, 1, 1)
    return r1 + r2 + r4 + c5


if __name__ == "__main__":
    key = jax.random.PRNGKey(0)
    k1, k2, k3, k4, k5, kp = jax.random.split(key, 6)

    # Small shapes consistent with the forward (x1/x2/x4 must match spatially
    # for the adds to be defined; x3 is dead, x5 is (1,3,1,1) as in the ref).
    x1 = jax.random.normal(k1, (1, 3, 16, 16), jnp.float32)
    x2 = jax.random.normal(k2, (1, 3, 16, 16), jnp.float32)
    x3 = jax.random.normal(k3, (1, 3, 12, 12), jnp.float32)
    x4 = jax.random.normal(k4, (1, 3, 16, 16), jnp.float32)
    x5 = jax.random.normal(k5, (1, 3, 1, 1), jnp.float32)

    params = init_params(kp)

    v7 = model_forward(params, x1, x2, x3, x4, x5)
    jax.block_until_ready(v7)

    assert v7.shape == (1, 8, 18, 18)
    assert jnp.allclose(v7, _ref_v7(params, x1, x2, x4, x5),
                        atol=1e-5, rtol=1e-5)

    # Second check with batch=2 and a larger spatial size so the grid has >1
    # step along the batch axis (exercises the multi-block / dual-TC path).
    y1 = jax.random.normal(k1, (2, 3, 48, 48), jnp.float32)
    y2 = jax.random.normal(k2, (2, 3, 48, 48), jnp.float32)
    y4 = jax.random.normal(k4, (2, 3, 48, 48), jnp.float32)
    v7b = model_forward(params, y1, y2, x3, y4, x5)
    jax.block_until_ready(v7b)

    assert v7b.shape == (2, 8, 50, 50)
    assert jnp.allclose(v7b, _ref_v7(params, y1, y2, y4, x5),
                        atol=1e-5, rtol=1e-5)

    print("KERNEL_OK")
</pallas_src>

<mosaic_0001>
module attributes {stable_mosaic.version = 11 : i64} {
  func.func @_fused_v7_kernel(%arg0: i32, %arg1: i32, %arg2: memref<1x3x256xf32, #tpu.memory_space<vmem>>, %arg3: memref<1x3x256xf32, #tpu.memory_space<vmem>>, %arg4: memref<1x3x256xf32, #tpu.memory_space<vmem>>, %arg5: memref<8x3xf32, #tpu.memory_space<vmem>>, %arg6: memref<8x3xf32, #tpu.memory_space<vmem>>, %arg7: memref<8x3xf32, #tpu.memory_space<vmem>>, %arg8: memref<1x8x256xf32, #tpu.memory_space<vmem>>) attributes {dimension_semantics = [#tpu.dimension_semantics<parallel>, #tpu.dimension_semantics<parallel>], iteration_bounds = array<i64: 1, 1>, scalar_prefetch = 0 : i64, scratch_operands = 0 : i64, tpu.core_type = #tpu.core_type<tc>, window_params = [{transform_indices = @transform_0, window_bounds = array<i64: 1, 3, 256>}, {transform_indices = @transform_1, window_bounds = array<i64: 1, 3, 256>}, {transform_indices = @transform_2, window_bounds = array<i64: 1, 3, 256>}, {pipeline_mode = #tpu.pipeline_mode<synchronous>, transform_indices = @transform_3, window_bounds = array<i64: 8, 3>}, {pipeline_mode = #tpu.pipeline_mode<synchronous>, transform_indices = @transform_4, window_bounds = array<i64: 8, 3>}, {pipeline_mode = #tpu.pipeline_mode<synchronous>, transform_indices = @transform_5, window_bounds = array<i64: 8, 3>}, {transform_indices = @transform_6, window_bounds = array<i64: 1, 8, 256>}]} {
    %c0 = arith.constant 0 : index
    %c0_0 = arith.constant 0 : index
    %0 = vector.load %arg5[%c0, %c0_0] : memref<8x3xf32, #tpu.memory_space<vmem>>, vector<8x3xf32>
    %c0_1 = arith.constant 0 : index
    %c0_2 = arith.constant 0 : index
    %c0_3 = arith.constant 0 : index
    %1 = vector.load %arg2[%c0_1, %c0_2, %c0_3] : memref<1x3x256xf32, #tpu.memory_space<vmem>>, vector<1x3x256xf32>
    %2 = vector.shape_cast %1 : vector<1x3x256xf32> to vector<3x256xf32>
    %cst = arith.constant dense<0.000000e+00> : vector<8x256xf32>
    %3 = tpu.matmul %0, %2, %cst {dimension_numbers = #tpu.dot_dimension_numbers<[1], [0], [0], [1], [0, 0, 1, 1], [], []>} : vector<8x3xf32>, vector<3x256xf32>, vector<8x256xf32> -> vector<8x256xf32>
    %c0_4 = arith.constant 0 : index
    %c0_5 = arith.constant 0 : index
    %4 = vector.load %arg6[%c0_4, %c0_5] : memref<8x3xf32, #tpu.memory_space<vmem>>, vector<8x3xf32>
    %c0_6 = arith.constant 0 : index
    %c0_7 = arith.constant 0 : index
    %c0_8 = arith.constant 0 : index
    %5 = vector.load %arg3[%c0_6, %c0_7, %c0_8] : memref<1x3x256xf32, #tpu.memory_space<vmem>>, vector<1x3x256xf32>
    %6 = vector.shape_cast %5 : vector<1x3x256xf32> to vector<3x256xf32>
    %cst_9 = arith.constant dense<0.000000e+00> : vector<8x256xf32>
    %7 = tpu.matmul %4, %6, %cst_9 {dimension_numbers = #tpu.dot_dimension_numbers<[1], [0], [0], [1], [0, 0, 1, 1], [], []>} : vector<8x3xf32>, vector<3x256xf32>, vector<8x256xf32> -> vector<8x256xf32>
    %8 = arith.addf %3, %7 : vector<8x256xf32>
    %c0_10 = arith.constant 0 : index
    %c0_11 = arith.constant 0 : index
    %9 = vector.load %arg7[%c0_10, %c0_11] : memref<8x3xf32, #tpu.memory_space<vmem>>, vector<8x3xf32>
    %c0_12 = arith.constant 0 : index
    %c0_13 = arith.constant 0 : index
    %c0_14 = arith.constant 0 : index
    %10 = vector.load %arg4[%c0_12, %c0_13, %c0_14] : memref<1x3x256xf32, #tpu.memory_space<vmem>>, vector<1x3x256xf32>
    %11 = vector.shape_cast %10 : vector<1x3x256xf32> to vector<3x256xf32>
    %cst_15 = arith.constant dense<0.000000e+00> : vector<8x256xf32>
    %12 = tpu.matmul %9, %11, %cst_15 {dimension_numbers = #tpu.dot_dimension_numbers<[1], [0], [0], [1], [0, 0, 1, 1], [], []>} : vector<8x3xf32>, vector<3x256xf32>, vector<8x256xf32> -> vector<8x256xf32>
    %13 = arith.addf %8, %12 : vector<8x256xf32>
    %c0_16 = arith.constant 0 : index
    %c0_17 = arith.constant 0 : index
    %c0_18 = arith.constant 0 : index
    %14 = vector.load %arg8[%c0_16, %c0_17, %c0_18] : memref<1x8x256xf32, #tpu.memory_space<vmem>>, vector<1x8x256xf32>
    %15 = vector.shape_cast %14 : vector<1x8x256xf32> to vector<8x256xf32>
    %16 = vector.shape_cast %13 : vector<8x256xf32> to vector<1x8x256xf32>
    tpu.vector_store %arg8[%c0_16, %c0_17, %c0_18], %16 {strides = array<i32>} : memref<1x8x256xf32, #tpu.memory_space<vmem>>, vector<1x8x256xf32>,
    return
  }
  func.func @transform_0(%arg0: i32, %arg1: i32) -> (i32, i32, i32) {
    %c0_i32 = arith.constant 0 : i32
    %c0_i32_0 = arith.constant 0 : i32
    return %arg0, %c0_i32, %arg1 : i32, i32, i32
  }
  func.func @transform_1(%arg0: i32, %arg1: i32) -> (i32, i32, i32) {
    %c0_i32 = arith.constant 0 : i32
    %c0_i32_0 = arith.constant 0 : i32
    return %arg0, %c0_i32, %arg1 : i32, i32, i32
  }
  func.func @transform_2(%arg0: i32, %arg1: i32) -> (i32, i32, i32) {
    %c0_i32 = arith.constant 0 : i32
    %c0_i32_0 = arith.constant 0 : i32
    return %arg0, %c0_i32, %arg1 : i32, i32, i32
  }
  func.func @transform_3(%arg0: i32, %arg1: i32) -> (i32, i32) {
    %c0_i32 = arith.constant 0 : i32
    %c0_i32_0 = arith.constant 0 : i32
    %c0_i32_1 = arith.constant 0 : i32
    return %c0_i32, %c0_i32_0 : i32, i32
  }
  func.func @transform_4(%arg0: i32, %arg1: i32) -> (i32, i32) {
    %c0_i32 = arith.constant 0 : i32
    %c0_i32_0 = arith.constant 0 : i32
    %c0_i32_1 = arith.constant 0 : i32
    return %c0_i32, %c0_i32_0 : i32, i32
  }
  func.func @transform_5(%arg0: i32, %arg1: i32) -> (i32, i32) {
    %c0_i32 = arith.constant 0 : i32
    %c0_i32_0 = arith.constant 0 : i32
    %c0_i32_1 = arith.constant 0 : i32
    return %c0_i32, %c0_i32_0 : i32, i32
  }
  func.func @transform_6(%arg0: i32, %arg1: i32) -> (i32, i32, i32) {
    %c0_i32 = arith.constant 0 : i32
    %c0_i32_0 = arith.constant 0 : i32
    return %arg0, %c0_i32, %arg1 : i32, i32, i32
  }
}

</mosaic_0001>

<bundles_post_ra>
// kernel: model_forward.1
= control target key start
LH: loop header
LB: loop body
LE: loop exit
PB: predicated region body
PF: predicated region fallthrough
CT: control target
= control target key end

     0   :  { %vm35_vm0 = vcmask 1042432   ;;  %vm31_vm1 = vcmask 23552   ;;  %s275_s1 = inlined_call_operand.vmem [shape: f32[1,3,256], index: 1, kind: input, shape index: {}]   ;;  %s276_s0 = inlined_call_operand.vmem [shape: f32[1,3,256], index: 0, kind: input, shape index: {}]   ;;  %s277_s4 = inlined_call_operand.vmem [shape: f32[8,3], index: 4, kind: input, shape index: {}]   ;;  %s278_s2 = inlined_call_operand.vmem [shape: f32[1,3,256], index: 2, kind: input, shape index: {}]   ;;  %s279_s3 = inlined_call_operand.vmem [shape: f32[8,3], index: 3, kind: input, shape index: {}]   ;;  %s280_s5 = inlined_call_operand.vmem [shape: f32[8,3], index: 5, kind: input, shape index: {}]   ;;  %s281_s6 = inlined_call_operand.vmem [shape: f32[1,8,256], index: 6, kind: output, shape index: {}]  }
   0x1   :  { %v26_v0 = vld [vmem:[%s275_s1] sm:$0x77] }
   0x2   :  { %28 = vst [vmem:[#allocation1] ss:$2 sm:$0xff] %v26_v0  ;;  %v24_v1 = vld [vmem:[%s276_s0] sm:$0x77] }
   0x3   :  { %v25_v2 = vld [vmem:[%s277_s4] sm:$0xff] }
   0x4   :  { %v132_v5 = vld [vmem:[%s278_s2] sm:$0x77] }
   0x5   :  { %v23_v6 = vld [vmem:[%s279_s3] sm:$0xff] }
   0x6   :  { %v131_v9 = vld [vmem:[%s280_s5] sm:$0xff] }
   0x9   :  { %v29_v3 = vld.sshfl [vmem:[#allocation1] sm:$0xff pattern:$0x75316420]  ;;  %v30_v4 = vld.sshfl [vmem:[#allocation1 + $0x8] sm:$0xff pattern:$0x75316420] }
   0xa   :  { %192 = vmatpush.msk.msra.mxu0 %vm35_vm0, %v29_v3  ;;  %194 = vmatpush.msk.msra.mxu1 %vm35_vm0, %v30_v4  ;;  %81 = vst [vmem:[#allocation1] ss:$2 sm:$0xff] %v24_v1 }
   0xb   :  { %193 = vmatmul.msk.f32.vlgmr.msra.gmra.mxu0 %vm31_vm1, %v25_v2  ;;  %195 = vmatmul.msk.f32.vlgmr.msra.gmra.mxu1 %vm31_vm1, %v25_v2 }
  0x11   :  { %v82_v7 = vld.sshfl [vmem:[#allocation1] sm:$0xff pattern:$0x75316420]  ;;  %v83_v8 = vld.sshfl [vmem:[#allocation1 + $0x8] sm:$0xff pattern:$0x75316420] }
  0x12   :  { %196 = vmatpush.msk.msra.mxu2 %vm35_vm0, %v82_v7  ;;  %198 = vmatpush.msk.msra.mxu3 %vm35_vm0, %v83_v8  ;;  %134 = vst [vmem:[#allocation1] ss:$2 sm:$0xff] %v132_v5 }
  0x13   :  { %197 = vmatmul.msk.f32.vlgmr.msra.gmra.mxu2 %vm31_vm1, %v23_v6  ;;  %199 = vmatmul.msk.f32.vlgmr.msra.gmra.mxu3 %vm31_vm1, %v23_v6 }
  0x19   :  { %v135_v10 = vld.sshfl [vmem:[#allocation1] sm:$0xff pattern:$0x75316420]  ;;  %v136_v11 = vld.sshfl [vmem:[#allocation1 + $0x8] sm:$0xff pattern:$0x75316420] }
  0x1a   :  { %200 = vmatpush.msk.msrb.mxu0 %vm35_vm0, %v135_v10  ;;  %202 = vmatpush.msk.msrb.mxu1 %vm35_vm0, %v136_v11 }
  0x1b   :  { %201 = vmatmul.msk.f32.vlgmr.msrb.gmra.mxu0 %vm31_vm1, %v131_v9  ;;  %203 = vmatmul.msk.f32.vlgmr.msrb.gmra.mxu1 %vm31_vm1, %v131_v9 }
  0x88   :  { %v57_v12 = vpop.f32.mrf.mxu0  ;;  %v77_v13 = vpop.f32.mrf.mxu1 }
  0x96   :  { %v108_v14 = vpop.f32.mrf.mxu2  ;;  %v128_v15 = vpop.f32.mrf.mxu3 }
  0x97   :  { %v109_v16 = vadd.f32 %v108_v14, %v57_v12  ;;  %v129_v17 = vadd.f32 %v128_v15, %v77_v13 }
  0x98   :  { %v161_v18 = vpop.f32.mrf.mxu0  ;;  %v181_v19 = vpop.f32.mrf.mxu1 }
  0x99   :  { %v184_v20 = vadd.f32 %v161_v18, %v109_v16  ;;  %v185_v21 = vadd.f32 %v181_v19, %v129_v17 }
  0x9b   :  { %186 = vst [vmem:[%s281_s6] sm:$0xff] %v184_v20 }
  0x9c   :  { %187 = vst [vmem:[%s281_s6 + $0x8] sm:$0xff] %v185_v21 }

</bundles_post_ra>
